<compile_context>
chip_gen: v7x
topology: tpu7x:2x2x1
jax: 0.10.0
libtpu: 0.0.40
codegen_flags: <defaults>
</compile_context>

<pallas_src>
import functools

import jax
import jax.numpy as jnp
from jax.experimental import pallas as pl
from jax.experimental.pallas import tpu as pltpu


def _transition_kernel(x_ref, gamma_ref, beta_ref, wt_ref, u_ref, o_ref, *, eps):
    # x_ref:     (N, C, H*W)    whole batch (NCHW-flat), resident across grid steps
    # gamma_ref: (C, 1)         BatchNorm2d weight
    # beta_ref:  (C, 1)         BatchNorm2d bias
    # wt_ref:    (Cout, C)      ConvTranspose2d 1x1 weight, transposed (channel mix)
    # u_ref:     (H*W, 4*H*W)   0/1 nearest-2x (both dims) duplication matrix
    # o_ref:     (Cout, 4*H*W)  this step's image; lane index = (2h+dh)*2W + (2w+dw)
    n = pl.program_id(0)
    batch = x_ref.shape[0]
    inv_cnt = 1.0 / (batch * x_ref.shape[2])

    # Training-mode BatchNorm2d batch statistics, two-pass over the VMEM-resident batch
    # (matches the two-pass PyTorch/JAX numerics; no E[x^2]-E[x]^2 cancellation).
    # Static unroll over N: pure 2D lane-reduces + VPU adds, all on data already in VMEM.
    s1 = jnp.sum(x_ref[0], axis=1, keepdims=True)
    for i in range(1, batch):
        s1 = s1 + jnp.sum(x_ref[i], axis=1, keepdims=True)
    mean = s1 * inv_cnt                                                         # (C, 1)
    d0 = x_ref[0] - mean
    s2 = jnp.sum(d0 * d0, axis=1, keepdims=True)
    for i in range(1, batch):
        di = x_ref[i] - mean
        s2 = s2 + jnp.sum(di * di, axis=1, keepdims=True)
    var = s2 * inv_cnt                                                          # (C, 1)

    # Fold BN into a per-channel scale/shift; apply BN + ReLU to this step's image
    # (lane broadcast of the (C, 1) vectors on the VPU).
    scale = gamma_ref[...] * jax.lax.rsqrt(var + eps)                           # (C, 1)
    shift = beta_ref[...] - mean * scale                                        # (C, 1)
    y = jnp.maximum(x_ref[n] * scale + shift, 0.0)                              # (C, HW)

    # Nearest x2 in both spatial dims as one 0/1 matmul (MXU), then the 1x1 ConvTranspose
    # channel mix.  Single dense (Cout, 4*H*W) = (8, 1024) store per image.
    yu = jnp.dot(y, u_ref[...], preferred_element_type=jnp.float32)             # (C, 4HW)
    o_ref[...] = jnp.dot(wt_ref[...], yu, preferred_element_type=jnp.float32)   # (Cout, 4HW)


def transition_block(x_nchw, gamma, beta, conv_w, eps=1e-5, drop_rate=0.0):
    """TransitionBlock forward. x_nchw: (N, Cin, H, W) f32 -> (N, Cout, 2H, 2W) f32."""
    N, C, H, W = x_nchw.shape
    Cout = conv_w.shape[1]
    HW = H * W

    x3 = x_nchw.astype(jnp.float32).reshape(N, C, HW)            # free contiguous reshape
    gamma2 = gamma.astype(jnp.float32).reshape(C, 1)
    beta2 = beta.astype(jnp.float32).reshape(C, 1)
    w_t = conv_w[:, :, 0, 0].astype(jnp.float32).T                # (Cout, Cin)

    # 0/1 nearest-neighbour x2 duplication matrix for BOTH spatial dims:
    #   U[h*W + w, (2h+dh)*2W + (2w+dw)] = 1   for dh, dw in {0, 1}.
    # TODO(synk): U is O((H*W)^2) bytes (1 MiB at 16x16); for H*W >~ 2048 switch back to the
    # separable per-dim duplication matmuls (or tile along W) to stay inside v7x's 64 MiB VMEM.
    dup_h = jnp.kron(jnp.eye(H, dtype=jnp.float32), jnp.ones((1, 2), jnp.float32))  # (H, 2H)
    dup_w = jnp.kron(jnp.eye(W, dtype=jnp.float32), jnp.ones((1, 2), jnp.float32))  # (W, 2W)
    u = jnp.kron(dup_h, dup_w)                                                       # (HW, 4HW)

    out3 = pl.pallas_call(
        functools.partial(_transition_kernel, eps=float(eps)),
        out_shape=jax.ShapeDtypeStruct((N, Cout, 4 * HW), jnp.float32),
        grid_spec=pltpu.PrefetchScalarGridSpec(
            num_scalar_prefetch=0,
            grid=(N,),                                      # one image per step, batch-parallel
            in_specs=[
                pl.BlockSpec((N, C, HW), lambda n: (0, 0, 0)),   # x: whole batch, constant idx
                pl.BlockSpec((C, 1), lambda n: (0, 0)),          # gamma
                pl.BlockSpec((C, 1), lambda n: (0, 0)),          # beta
                pl.BlockSpec((Cout, C), lambda n: (0, 0)),       # conv weight (transposed)
                pl.BlockSpec((HW, 4 * HW), lambda n: (0, 0)),    # fused 2D upsample matrix
            ],
            out_specs=pl.BlockSpec((None, Cout, 4 * HW), lambda n: (n, 0, 0)),
        ),
        compiler_params=pltpu.CompilerParams(
            dimension_semantics=("parallel",)),              # v7x: shard batch over both TCs
    )(x3, gamma2, beta2, w_t, u)

    # TODO(synk): F.dropout for drop_rate > 0 not implemented (module default dropRate=0.0).
    del drop_rate
    # TODO(synk): eval-mode BatchNorm (running statistics) not supported; training-mode only.

    return out3.reshape(N, Cout, 2 * H, 2 * W)                # free contiguous reshape


def _reference(x, gamma, beta, conv_w, eps=1e-5):
    """Pure-JAX reference of the PyTorch forward (training-mode BN, droprate=0)."""
    mean = jnp.mean(x, axis=(0, 2, 3), keepdims=True)
    var = jnp.mean((x - mean) ** 2, axis=(0, 2, 3), keepdims=True)
    xn = (x - mean) / jnp.sqrt(var + eps)
    xn = xn * gamma[None, :, None, None] + beta[None, :, None, None]
    xr = jnp.maximum(xn, 0.0)
    y = jnp.einsum("nchw,co->nohw", xr, conv_w[:, :, 0, 0])
    y = jnp.repeat(jnp.repeat(y, 2, axis=2), 2, axis=3)      # nearest upsample x2
    return y


if __name__ == "__main__":
    in_planes, out_planes = 4, 8
    N, H, W = 2, 16, 16

    key = jax.random.PRNGKey(0)
    kx, kg, kb, kw = jax.random.split(key, 4)

    x = jax.random.normal(kx, (N, in_planes, H, W), dtype=jnp.float32)
    # BatchNorm2d parameters (deterministic, non-trivial)
    gamma = 1.0 + 0.1 * jax.random.normal(kg, (in_planes,), dtype=jnp.float32)
    beta = 0.1 * jax.random.normal(kb, (in_planes,), dtype=jnp.float32)
    # ConvTranspose2d weight: (in_planes, out_planes, 1, 1), bias=False
    conv_w = jax.random.normal(kw, (in_planes, out_planes, 1, 1), dtype=jnp.float32) * 0.2

    out = transition_block(x, gamma, beta, conv_w)
    out = jax.block_until_ready(out)

    ref = _reference(x, gamma, beta, conv_w)
    assert out.shape == (N, out_planes, 2 * H, 2 * W), out.shape
    max_err = float(jnp.max(jnp.abs(out - ref)))
    # Tolerance allows for MXU f32 rounding differing slightly from the XLA einsum reference.
    assert jnp.allclose(out, ref, atol=2e-3, rtol=2e-3), max_err

    print("KERNEL_OK")
</pallas_src>

<mosaic_0001>
module attributes {stable_mosaic.version = 11 : i64} {
  func.func @_transition_kernel(%arg0: i32, %arg1: memref<2x4x256xf32, #tpu.memory_space<vmem>>, %arg2: memref<4x1xf32, #tpu.memory_space<vmem>>, %arg3: memref<4x1xf32, #tpu.memory_space<vmem>>, %arg4: memref<8x4xf32, #tpu.memory_space<vmem>>, %arg5: memref<256x1024xf32, #tpu.memory_space<vmem>>, %arg6: memref<1x8x1024xf32, #tpu.memory_space<vmem>>) attributes {dimension_semantics = [#tpu.dimension_semantics<parallel>], iteration_bounds = array<i64: 2>, scalar_prefetch = 0 : i64, scratch_operands = 0 : i64, tpu.core_type = #tpu.core_type<tc>, window_params = [{pipeline_mode = #tpu.pipeline_mode<synchronous>, transform_indices = @transform_0, window_bounds = array<i64: 2, 4, 256>}, {pipeline_mode = #tpu.pipeline_mode<synchronous>, transform_indices = @transform_1, window_bounds = array<i64: 4, 1>}, {pipeline_mode = #tpu.pipeline_mode<synchronous>, transform_indices = @transform_2, window_bounds = array<i64: 4, 1>}, {pipeline_mode = #tpu.pipeline_mode<synchronous>, transform_indices = @transform_3, window_bounds = array<i64: 8, 4>}, {pipeline_mode = #tpu.pipeline_mode<synchronous>, transform_indices = @transform_4, window_bounds = array<i64: 256, 1024>}, {transform_indices = @transform_5, window_bounds = array<i64: 1, 8, 1024>}]} {
    %c0 = arith.constant 0 : index
    %c0_0 = arith.constant 0 : index
    %c0_1 = arith.constant 0 : index
    %0 = vector.load %arg1[%c0, %c0_0, %c0_1] : memref<2x4x256xf32, #tpu.memory_space<vmem>>, vector<1x4x256xf32>
    %1 = vector.shape_cast %0 : vector<1x4x256xf32> to vector<4x256xf32>
    %cst = arith.constant dense<0.000000e+00> : vector<4xf32>
    %2 = vector.multi_reduction <add>, %1, %cst [1] : vector<4x256xf32> to vector<4xf32>
    %3 = vector.shape_cast %2 : vector<4xf32> to vector<4x1xf32>
    %c1 = arith.constant 1 : index
    %c0_2 = arith.constant 0 : index
    %c0_3 = arith.constant 0 : index
    %4 = vector.load %arg1[%c1, %c0_2, %c0_3] : memref<2x4x256xf32, #tpu.memory_space<vmem>>, vector<1x4x256xf32>
    %5 = vector.shape_cast %4 : vector<1x4x256xf32> to vector<4x256xf32>
    %cst_4 = arith.constant dense<0.000000e+00> : vector<4xf32>
    %6 = vector.multi_reduction <add>, %5, %cst_4 [1] : vector<4x256xf32> to vector<4xf32>
    %7 = vector.shape_cast %6 : vector<4xf32> to vector<4x1xf32>
    %8 = arith.addf %3, %7 : vector<4x1xf32>
    %cst_5 = arith.constant 0.001953125 : f32
    %9 = vector.broadcast %cst_5 : f32 to vector<4x1xf32>
    %10 = arith.mulf %8, %9 : vector<4x1xf32>
    %c0_6 = arith.constant 0 : index
    %c0_7 = arith.constant 0 : index
    %c0_8 = arith.constant 0 : index
    %11 = vector.load %arg1[%c0_6, %c0_7, %c0_8] : memref<2x4x256xf32, #tpu.memory_space<vmem>>, vector<1x4x256xf32>
    %12 = vector.shape_cast %11 : vector<1x4x256xf32> to vector<4x256xf32>
    %13 = vector.broadcast %10 : vector<4x1xf32> to vector<4x256xf32>
    %14 = arith.subf %12, %13 : vector<4x256xf32>
    %15 = arith.mulf %14, %14 : vector<4x256xf32>
    %cst_9 = arith.constant dense<0.000000e+00> : vector<4xf32>
    %16 = vector.multi_reduction <add>, %15, %cst_9 [1] : vector<4x256xf32> to vector<4xf32>
    %17 = vector.shape_cast %16 : vector<4xf32> to vector<4x1xf32>
    %c1_10 = arith.constant 1 : index
    %c0_11 = arith.constant 0 : index
    %c0_12 = arith.constant 0 : index
    %18 = vector.load %arg1[%c1_10, %c0_11, %c0_12] : memref<2x4x256xf32, #tpu.memory_space<vmem>>, vector<1x4x256xf32>
    %19 = vector.shape_cast %18 : vector<1x4x256xf32> to vector<4x256xf32>
    %20 = vector.broadcast %10 : vector<4x1xf32> to vector<4x256xf32>
    %21 = arith.subf %19, %20 : vector<4x256xf32>
    %22 = arith.mulf %21, %21 : vector<4x256xf32>
    %cst_13 = arith.constant dense<0.000000e+00> : vector<4xf32>
    %23 = vector.multi_reduction <add>, %22, %cst_13 [1] : vector<4x256xf32> to vector<4xf32>
    %24 = vector.shape_cast %23 : vector<4xf32> to vector<4x1xf32>
    %25 = arith.addf %17, %24 : vector<4x1xf32>
    %cst_14 = arith.constant 0.001953125 : f32
    %26 = vector.broadcast %cst_14 : f32 to vector<4x1xf32>
    %27 = arith.mulf %25, %26 : vector<4x1xf32>
    %c0_15 = arith.constant 0 : index
    %c0_16 = arith.constant 0 : index
    %28 = vector.load %arg2[%c0_15, %c0_16] : memref<4x1xf32, #tpu.memory_space<vmem>>, vector<4x1xf32>
    %cst_17 = arith.constant 9.99999974E-6 : f32
    %29 = vector.broadcast %cst_17 : f32 to vector<4x1xf32>
    %30 = arith.addf %27, %29 : vector<4x1xf32>
    %31 = math.rsqrt %30 : vector<4x1xf32>
    %32 = arith.mulf %28, %31 : vector<4x1xf32>
    %c0_18 = arith.constant 0 : index
    %c0_19 = arith.constant 0 : index
    %33 = vector.load %arg3[%c0_18, %c0_19] : memref<4x1xf32, #tpu.memory_space<vmem>>, vector<4x1xf32>
    %34 = arith.mulf %10, %32 : vector<4x1xf32>
    %35 = arith.subf %33, %34 : vector<4x1xf32>
    %36 = arith.index_cast %arg0 : i32 to index
    %c0_20 = arith.constant 0 : index
    %c0_21 = arith.constant 0 : index
    %37 = vector.load %arg1[%36, %c0_20, %c0_21] : memref<2x4x256xf32, #tpu.memory_space<vmem>>, vector<1x4x256xf32>
    %38 = vector.shape_cast %37 : vector<1x4x256xf32> to vector<4x256xf32>
    %39 = vector.broadcast %32 : vector<4x1xf32> to vector<4x256xf32>
    %40 = arith.mulf %38, %39 : vector<4x256xf32>
    %41 = vector.broadcast %35 : vector<4x1xf32> to vector<4x256xf32>
    %42 = arith.addf %40, %41 : vector<4x256xf32>
    %cst_22 = arith.constant 0.000000e+00 : f32
    %43 = vector.broadcast %cst_22 : f32 to vector<4x256xf32>
    %44 = arith.maximumf %42, %43 : vector<4x256xf32>
    %c0_23 = arith.constant 0 : index
    %c0_24 = arith.constant 0 : index
    %45 = vector.load %arg5[%c0_23, %c0_24] : memref<256x1024xf32, #tpu.memory_space<vmem>>, vector<256x1024xf32>
    %cst_25 = arith.constant dense<0.000000e+00> : vector<4x1024xf32>
    %46 = tpu.matmul %44, %45, %cst_25 {dimension_numbers = #tpu.dot_dimension_numbers<[1], [0], [0], [1], [0, 0, 1, 1], [], []>} : vector<4x256xf32>, vector<256x1024xf32>, vector<4x1024xf32> -> vector<4x1024xf32>
    %c0_26 = arith.constant 0 : index
    %c0_27 = arith.constant 0 : index
    %47 = vector.load %arg4[%c0_26, %c0_27] : memref<8x4xf32, #tpu.memory_space<vmem>>, vector<8x4xf32>
    %cst_28 = arith.constant dense<0.000000e+00> : vector<8x1024xf32>
    %48 = tpu.matmul %47, %46, %cst_28 {dimension_numbers = #tpu.dot_dimension_numbers<[1], [0], [0], [1], [0, 0, 1, 1], [], []>} : vector<8x4xf32>, vector<4x1024xf32>, vector<8x1024xf32> -> vector<8x1024xf32>
    %c0_29 = arith.constant 0 : index
    %c0_30 = arith.constant 0 : index
    %c0_31 = arith.constant 0 : index
    %49 = vector.load %arg6[%c0_29, %c0_30, %c0_31] : memref<1x8x1024xf32, #tpu.memory_space<vmem>>, vector<1x8x1024xf32>
    %50 = vector.shape_cast %49 : vector<1x8x1024xf32> to vector<8x1024xf32>
    %51 = vector.shape_cast %48 : vector<8x1024xf32> to vector<1x8x1024xf32>
    tpu.vector_store %arg6[%c0_29, %c0_30, %c0_31], %51 {strides = array<i32>} : memref<1x8x1024xf32, #tpu.memory_space<vmem>>, vector<1x8x1024xf32>,
    return
  }
  func.func @transform_0(%arg0: i32) -> (i32, i32, i32) {
    %c0_i32 = arith.constant 0 : i32
    %c0_i32_0 = arith.constant 0 : i32
    %c0_i32_1 = arith.constant 0 : i32
    %c0_i32_2 = arith.constant 0 : i32
    return %c0_i32, %c0_i32_0, %c0_i32_1 : i32, i32, i32
  }
  func.func @transform_1(%arg0: i32) -> (i32, i32) {
    %c0_i32 = arith.constant 0 : i32
    %c0_i32_0 = arith.constant 0 : i32
    %c0_i32_1 = arith.constant 0 : i32
    return %c0_i32, %c0_i32_0 : i32, i32
  }
  func.func @transform_2(%arg0: i32) -> (i32, i32) {
    %c0_i32 = arith.constant 0 : i32
    %c0_i32_0 = arith.constant 0 : i32
    %c0_i32_1 = arith.constant 0 : i32
    return %c0_i32, %c0_i32_0 : i32, i32
  }
  func.func @transform_3(%arg0: i32) -> (i32, i32) {
    %c0_i32 = arith.constant 0 : i32
    %c0_i32_0 = arith.constant 0 : i32
    %c0_i32_1 = arith.constant 0 : i32
    return %c0_i32, %c0_i32_0 : i32, i32
  }
  func.func @transform_4(%arg0: i32) -> (i32, i32) {
    %c0_i32 = arith.constant 0 : i32
    %c0_i32_0 = arith.constant 0 : i32
    %c0_i32_1 = arith.constant 0 : i32
    return %c0_i32, %c0_i32_0 : i32, i32
  }
  func.func @transform_5(%arg0: i32) -> (i32, i32, i32) {
    %c0_i32 = arith.constant 0 : i32
    %c0_i32_0 = arith.constant 0 : i32
    %c0_i32_1 = arith.constant 0 : i32
    return %arg0, %c0_i32, %c0_i32_0 : i32, i32, i32
  }
}

</mosaic_0001>

<bundles_post_ra>
// kernel: tpu_custom_call.1
= control target key start
LH: loop header
LB: loop body
LE: loop exit
PB: predicated region body
PF: predicated region fallthrough
CT: control target
= control target key end

     0   :  { %10 = vsyncpa [#allocation3], 0  ;;  %s1913_s0 = inlined_call_operand.vmem [shape: f32[2,4,256], index: 0, kind: input, shape index: {}]   ;;  %s1914_s1 = inlined_call_operand.vmem [shape: f32[4,1], index: 1, kind: input, shape index: {}]   ;;  %s1915_s2 = inlined_call_operand.vmem [shape: f32[4,1], index: 2, kind: input, shape index: {}]   ;;  %s1916_s3 = inlined_call_operand.vmem [shape: f32[8,4], index: 3, kind: input, shape index: {}]   ;;  %s1917_s4 = inlined_call_operand.hbm [shape: f32[256,1024], index: 4, kind: input, shape index: {}]   ;;  %s1918_s5 = inlined_call_operand.hbm [shape: f32[2,8,1024], index: 5, kind: output, shape index: {}]  }
   0x1   :  { %11 = vsyncpa [#allocation4], 0 }
   0x2   :  { %13 = vsyncpa [#allocation4 + $0x1], 0  ;;  %s1727_s18 = smov 0   ;;  %s1729_s19 = smov 0  }
   0x3   :  { %s1731_s20 = smov 0   ;;  %s1733_s21 = smov 0  }
   0x4 LB: > { %s1748_s22 = sadd.s32 4294967295, %s1688_s21   ;;  %s1249_s23 = sadd.s32 4294967294, %s1688_s21   ;;  %s1688_s21 = sphi %s1733_s21, %s1934_s21   ;;  %s1684_s20 = sphi %s1731_s20, %s1933_s20   ;;  %s1680_s19 = sphi %s1729_s19, %s1932_s19   ;;  %s1676_s18 = sphi %s1727_s18, %s1931_s18  }
   0x5   : > { %s1752_s24 = sadd.s32 1, %s1688_s21   ;;  %s131_s25 = sadd.s32 1, %s1684_s20 }
   0x6   : > { %s128_s26 = ssub.s32 %s1688_s21, %s1752_s24  ;;  %p141_p0 = scmp.ne.s32.totalorder %s1684_s20, %s1680_s19 }
   0x7   : > { %p129_p1 = scmp.eq.s32.totalorder %s128_s26, 0  ;;  %p142_p2 = scmp.eq.s32.totalorder %s1748_s22, 1 }
   0x8   : > { %p147_p3 = scmp.ne.s32.totalorder %s1680_s19, %s1676_s18  ;;  %p148_p4 = scmp.eq.s32.totalorder %s1249_s23, 1 }
   0x9   : > { %s1763_s27 = scalar_select %p129_p1, %s1684_s20, %s131_s25  }
   0xa   : > { %p1765_p5 = por %p142_p2, %p141_p0  ;;  %p1769_p6 = por %p148_p4, %p147_p3 }
   0xb   : > { %p1250_p7 = scmp.ge.s32.totalorder %s1688_s21, 1  ;;  %p155_p8 = scmp.lt.s32.totalorder %s1688_s21, 3 }
   0xc   : > { %s1922_s28 = scalar_select %p1765_p5, 1, 0 }
   0xd   : > { %s1923_s29 = scalar_select %p1769_p6, 1, 0 }
   0xe   : > { %p1919_p9 = scmp.eq.s32.totalorder %s1748_s22, 0  ;;  %p1776_p10 = pnand %p1250_p7, %p155_p8 }
   0xf   : > { %s1690_s6 = smov [#allocation2]   ;;  %s1594_s11 = scalar_lea.hbm %s1917_s4, 32768 }
  0x10   : > { %s1924_s30 = scalar_select %p1776_p10, 1, 0 }
  0x11   : > { %s179_s7 = sshll.u32 %s1690_s6, 4  ;;  %p1539_p11 = pneg %p1776_p10  ;;  %s180_s7 = int_to_ptr.vmem [resolvable:$true] %s179_s7 }
  0x12   : > { %p1595_p13 = scmp.ne.s32.totalorder %s1917_s4, %s1594_s11  ;;  %p1601_p3 = scmp.lt.u32.totalorder %s1594_s11, %s1917_s4 }
  0x13   : > { %p1784_p12 = pnand %p1919_p9, %p1539_p11 }
  0x15   : > { %p1596_p0 = pneg %p1784_p12 }
  0x17   : > { %p1597_p1 = pnand %p1596_p0, %p1595_p13 }
  0x19   : > { %p1598_p2 = pneg %p1597_p1 }
  0x1b   : > { %p1603_p4 = pnand %p1601_p3, %p1598_p2 }
  0x1d   : > { %1606 = shalt.err (!%p1603_p4)
}
  0x1e   : > { %s1607_s16 = scalar_lea.vmem %s180_s7, 32768  ;;  %p1615_p9 = scmp.lt.s32.totalorder %s180_s7, %s180_s7 }
  0x1f   : > { %p1608_p7 = scmp.ne.s32.totalorder %s180_s7, %s1607_s16  ;;  %p1616_p6 = scmp.lt.s32.totalorder %s1607_s16, %s1607_s16 }
  0x21   : > { %p1610_p8 = pnand %p1608_p7, %p1596_p0  ;;  %p1617_p5 = por %p1616_p6, %p1615_p9 }
  0x23   : > { %p1611_p11 = pneg %p1610_p8 }
  0x25   : > { %p1618_p10 = pnand %p1617_p5, %p1611_p11 }
  0x27   : > { %1621 = shalt.err (!%p1618_p10)
}
  0x28   : > { %s1691_s17 = smov 1024   ;;  %s1692_s23 = smov 64  }
  0x29   : > { %1542 = dma.hbm_to_vmem [thread:$0]  (!%p1784_p12), %s1917_s4, 32768, %s180_s7, [#allocation3], %s1691_s17, %s1691_s17, %s1692_s23  }
  0x2a   : > { %p1926_p13 = scmp.ne.s32.totalorder %s1924_s30, 0 }
  0x2b   : > { %p1927_p1 = scmp.eq.s32.totalorder (!%p1926_p13), %s1748_s22, 0 }
  0x2c   : > { %195 = sbr.rel (%p1926_p13) target bundleno = 1031 (0x407), region = 40 }
  0x33   : > { %1667 = dma.done.wait (%p1927_p1), [#allocation3], 32768   ;;  %p1928_p0 = pmov %p1927_p1 }
  0x34   : > { %vm222_vm0 = vcmask 1043456   ;;  %v218_v0 = vld [vmem:[%s1913_s0] sm:$0xff]  ;;  %v1255_v1 = vld [vmem:[%s1913_s0 + $0x8] sm:$0xff]  ;;  %v1693_v10 = vmov 839922192   ;;  %v244_v12 = vlaneseq  ;;  %v1694_v33 = vmov 0  }
  0x35   : > { %1669 = vsyncadd (%p1928_p0), [#allocation3], 4294934528  ;;  %v220_v2 = vcombine.high %v218_v0, %v218_v0  ;;  %v223_v3 = vsel %vm222_vm0, %v218_v0, 0.0  ;;  %v231_v4 = vcombine.high %v1255_v1, %v1255_v1  ;;  %v233_v6 = vsel %vm222_vm0, %v1255_v1, 0.0  ;;  %1588 = vset.pattern.permute.xlu0 %v1694_v33  ;;  %1589 = vset.pattern.permute.xlu1 %v1694_v33  ;;  %v310_v34 = vld [vmem:[#allocation2 + $0x8] sm:$0xff]  ;;  %v312_v36 = vld [vmem:[#allocation2 + $0x18] sm:$0xff] }
  0x36   : > { %v242_v11 = vunpack.c.l.s4 %v1693_v10  ;;  %v245_v15 = vshrl.u32 %v244_v12, 7  ;;  %v318_v35 = vld [vmem:[#allocation2 + $0x48] sm:$0xff]  ;;  %v320_v38 = vld [vmem:[#allocation2 + $0x58] sm:$0xff]  ;;  %v309_v39 = vld [vmem:[#allocation2] sm:$0xff]  ;;  %s1275_s13 = sshll.u32 %s1748_s22, 3  ;;  %vm853_vm1 = vcmask 31744  }
  0x37   : > { %v224_v5 = vsel %vm222_vm0, %v220_v2, 0.0  ;;  %v234_v7 = vsel %vm222_vm0, %v231_v4, 0.0  ;;  %v1277_v37 = vpack.c.bf16 %v318_v35, %v310_v34  ;;  %v317_v40 = vld [vmem:[#allocation2 + $0x40] sm:$0xff]  ;;  %v1341_v41 = vpack.c.bf16 %v320_v38, %v312_v36  ;;  %v311_v43 = vld [vmem:[#allocation2 + $0x10] sm:$0xff]  ;;  %v326_v45 = vld [vmem:[#allocation2 + $0x88] sm:$0xff]  ;;  %s280_s16 = scalar_lea.vmem %s1913_s0, %s1275_s13  ;;  %s215_s25 = sand.u32 1, %s1680_s19  }
  0x38   : > { %v225_v8 = vadd.f32 %v224_v5, %v223_v3  ;;  %v235_v9 = vadd.f32 %v234_v7, %v233_v6  ;;  %v243_v14 = vunpack.c.0.s8 %v242_v11  ;;  %v1279_v42 = vpack.c.bf16 %v317_v40, %v309_v39  ;;  %v319_v44 = vld [vmem:[#allocation2 + $0x50] sm:$0xff]  ;;  %v334_v47 = vld [vmem:[#allocation2 + $0xc8] sm:$0xff]  ;;  %v328_v48 = vld [vmem:[#allocation2 + $0x98] sm:$0xff]  ;;  %s1254_s26 = sshll.u32 %s215_s25, 6  ;;  %s1276_s9 = sshll.u32 %s1748_s22, 10 }
  0x39   : > { %1278 = vmatprep.subr.bf16.mxu0 %v1277_v37  ;;  %v1343_v46 = vpack.c.bf16 %v319_v44, %v311_v43  ;;  %v336_v49 = vld [vmem:[#allocation2 + $0xd8] sm:$0xff]  ;;  %1342 = vmatprep.subr.bf16.mxu1 %v1341_v41  ;;  %v1281_v50 = vpack.c.bf16 %v334_v47, %v326_v45  ;;  %v325_v52 = vld [vmem:[#allocation2 + $0x80] sm:$0xff]  ;;  %v327_v54 = vld [vmem:[#allocation2 + $0x90] sm:$0xff]  ;;  %s217_s6 = scalar_lea.vmem [#allocation5], %s1254_s26  ;;  %s1871_s7 = scalar_lea.hbm %s1918_s5, %s1276_s9 }
  0x3a   : > { %226 = vadd.xlane.f32.xlu0 %v225_v8  ;;  %v1820_v17 = vsub.s32 %v243_v14, %v245_v15  ;;  %1280 = vmatpush1.bf16.msra.mxu0 %v1279_v42  ;;  %v1345_v51 = vpack.c.bf16 %v336_v49, %v328_v48  ;;  %v333_v53 = vld [vmem:[#allocation2 + $0xc0] sm:$0xff]  ;;  %v335_v56 = vld [vmem:[#allocation2 + $0xd0] sm:$0xff]  ;;  %v342_v57 = vld [vmem:[#allocation2 + $0x108] sm:$0xff]  ;;  %s1188_s10 = sshll.u32 %s217_s6, 4  ;;  %s1174_s22 = scalar_lea.sflag [#allocation4], %s215_s25  ;;  %s1873_s10 = int_to_ptr.vmem [resolvable:$true] %s1188_s10 }
  0x3b   : > { %1344 = vmatpush1.bf16.msra.mxu1 %v1343_v46  ;;  %v1283_v55 = vpack.c.bf16 %v333_v53, %v325_v52  ;;  %v350_v58 = vld [vmem:[#allocation2 + $0x148] sm:$0xff]  ;;  %1282 = vmatprep.subr.bf16.mxu0 %v1281_v50  ;;  %v1347_v59 = vpack.c.bf16 %v335_v56, %v327_v54  ;;  %v344_v61 = vld [vmem:[#allocation2 + $0x118] sm:$0xff]  ;;  %v341_v63 = vld [vmem:[#allocation2 + $0x100] sm:$0xff]  ;;  %s1622_s11 = scalar_lea.vmem %s1873_s10, 1024  ;;  %p1929_p6 = scmp.ne.s32.totalorder %s1922_s28, 0 }
  0x3c   : > { %1346 = vmatprep.subr.bf16.mxu1 %v1345_v51  ;;  %v1285_v60 = vpack.c.bf16 %v350_v58, %v342_v57  ;;  %v352_v62 = vld [vmem:[#allocation2 + $0x158] sm:$0xff]  ;;  %v343_v2 = vld [vmem:[#allocation2 + $0x110] sm:$0xff]  ;;  %v358_v5 = vld [vmem:[#allocation2 + $0x188] sm:$0xff]  ;;  %p1623_p5 = scmp.ne.s32.totalorder %s1873_s10, %s1622_s11  ;;  %s1696_s12 = smov [#allocation5]  }
  0x3d   : > { %v351_v3 = vld [vmem:[#allocation2 + $0x150] sm:$0xff]  ;;  %v366_v6 = vld [vmem:[#allocation2 + $0x1c8] sm:$0xff]  ;;  %v360_v7 = vld [vmem:[#allocation2 + $0x198] sm:$0xff]  ;;  %s1626_s13 = sshll.u32 %s1696_s12, 4  ;;  %s1627_s13 = int_to_ptr.vmem [resolvable:$false] %s1626_s13 }
  0x3e   : > { %236 = vadd.xlane.f32.xlu0 %v235_v9  ;;  %1284 = vmatpush1.bf16.msra.mxu0 %v1283_v55  ;;  %v1351_v8 = vpack.c.bf16 %v351_v3, %v343_v2  ;;  %v1289_v9 = vpack.c.bf16 %v366_v6, %v358_v5  ;;  %v368_v10 = vld [vmem:[#allocation2 + $0x1d8] sm:$0xff]  ;;  %v357_v11 = vld [vmem:[#allocation2 + $0x180] sm:$0xff]  ;;  %v359_v14 = vld [vmem:[#allocation2 + $0x190] sm:$0xff]  ;;  %p1624_p9 = pnand %p1623_p5, %p1929_p6  ;;  %s1628_s14 = scalar_lea.vmem %s1627_s13, 2048 }
  0x3f   : > { %1348 = vmatpush1.bf16.msra.mxu1 %v1347_v59  ;;  %1286 = vmatprep.subr.bf16.mxu0 %v1285_v60  ;;  %v365_v12 = vld [vmem:[#allocation2 + $0x1c0] sm:$0xff]  ;;  %v367_v15 = vld [vmem:[#allocation2 + $0x1d0] sm:$0xff]  ;;  %v400_v33 = vld [vmem:[#allocation2 + $0x2d8] sm:$0xff]  ;;  %p1629_p12 = scmp.lt.s32.totalorder %s1873_s10, %s1627_s13  ;;  %p1630_p2 = scmp.lt.s32.totalorder %s1628_s14, %s1622_s11 }
  0x40   : > { %v389_v37 = vld [vmem:[#allocation2 + $0x280] sm:$0xff]  ;;  %v391_v39 = vld [vmem:[#allocation2 + $0x290] sm:$0xff]  ;;  %v406_v42 = vld [vmem:[#allocation2 + $0x308] sm:$0xff]  ;;  %p1625_p10 = pneg %p1624_p9 }
  0x41   : > { %v397_v38 = vld [vmem:[#allocation2 + $0x2c0] sm:$0xff]  ;;  %v399_v41 = vld [vmem:[#allocation2 + $0x2d0] sm:$0xff]  ;;  %v414_v43 = vld [vmem:[#allocation2 + $0x348] sm:$0xff]  ;;  %p1631_p3 = por %p1630_p2, %p1629_p12 }
  0x42   : > { %v408_v44 = vld [vmem:[#allocation2 + $0x318] sm:$0xff]  ;;  %v1299_v46 = vpack.c.bf16 %v397_v38, %v389_v37  ;;  %v1363_v47 = vpack.c.bf16 %v399_v41, %v391_v39  ;;  %v1301_v48 = vpack.c.bf16 %v414_v43, %v406_v42  ;;  %v405_v49 = vld [vmem:[#allocation2 + $0x300] sm:$0xff]  ;;  %v407_v51 = vld [vmem:[#allocation2 + $0x310] sm:$0xff] }
  0x43   : > { %v416_v45 = vld [vmem:[#allocation2 + $0x358] sm:$0xff]  ;;  %v413_v50 = vld [vmem:[#allocation2 + $0x340] sm:$0xff]  ;;  %v415_v53 = vld [vmem:[#allocation2 + $0x350] sm:$0xff]  ;;  %p1632_p4 = pnand %p1631_p3, %p1625_p10 }
  0x44   : > { %v1365_v52 = vpack.c.bf16 %v416_v45, %v408_v44  ;;  %v422_v54 = vld [vmem:[#allocation2 + $0x388] sm:$0xff]  ;;  %v424_v56 = vld [vmem:[#allocation2 + $0x398] sm:$0xff]  ;;  %v1303_v58 = vpack.c.bf16 %v413_v50, %v405_v49  ;;  %v1367_v59 = vpack.c.bf16 %v415_v53, %v407_v51  ;;  %v471_v37 = vld [vmem:[#allocation2 + $0x510] sm:$0xff] }
  0x45   : > { %v430_v55 = vld [vmem:[#allocation2 + $0x3c8] sm:$0xff]  ;;  %v432_v57 = vld [vmem:[#allocation2 + $0x3d8] sm:$0xff]  ;;  %v479_v39 = vld [vmem:[#allocation2 + $0x550] sm:$0xff] }
  0x46   : > { %v1305_v60 = vpack.c.bf16 %v430_v55, %v422_v54  ;;  %v438_v2 = vld [vmem:[#allocation2 + $0x408] sm:$0xff]  ;;  %v448_v5 = vld [vmem:[#allocation2 + $0x458] sm:$0xff]  ;;  %v1383_v45 = vpack.c.bf16 %v479_v39, %v471_v37  ;;  %v487_v49 = vld [vmem:[#allocation2 + $0x590] sm:$0xff] }
  0x47   : > { %v446_v3 = vld [vmem:[#allocation2 + $0x448] sm:$0xff]  ;;  %v488_v42 = vld [vmem:[#allocation2 + $0x598] sm:$0xff]  ;;  %v495_v51 = vld [vmem:[#allocation2 + $0x5d0] sm:$0xff] }
  0x48   : > { %v494_v41 = vld [vmem:[#allocation2 + $0x5c8] sm:$0xff]  ;;  %v496_v43 = vld [vmem:[#allocation2 + $0x5d8] sm:$0xff]  ;;  %v543_v37 = vld [vmem:[#allocation2 + $0x750] sm:$0xff] }
  0x49   : > { %v1385_v50 = vpack.c.bf16 %v496_v43, %v488_v42  ;;  %v510_v53 = vld [vmem:[#allocation2 + $0x648] sm:$0xff]  ;;  %v504_v54 = vld [vmem:[#allocation2 + $0x618] sm:$0xff]  ;;  %v549_v43 = vld [vmem:[#allocation2 + $0x780] sm:$0xff] }
  0x4a   : > { %v512_v55 = vld [vmem:[#allocation2 + $0x658] sm:$0xff]  ;;  %v558_v39 = vld [vmem:[#allocation2 + $0x7c8] sm:$0xff] }
  0x4b   : > { %v560_v42 = vld [vmem:[#allocation2 + $0x7d8] sm:$0xff] }
  0xc7   : > { %v227_v13 = vpop.xlane.xlu0 %226 }
  0xcb   : > { %v237_v16 = vpop.xlane.xlu0 %236 }
  0xcc   : > { %v238_v18 = vadd.f32 %v237_v16, %v227_v13  ;;  %v1353_v13 = vpack.c.bf16 %v368_v10, %v360_v7  ;;  %v374_v16 = vld [vmem:[#allocation2 + $0x208] sm:$0xff]  ;;  %v445_v10 = vld [vmem:[#allocation2 + $0x440] sm:$0xff] }
  0xce   : > { %v1822_v19 = vmul.f32 0.001953125, %v238_v18  ;;  %v382_v18 = vld [vmem:[#allocation2 + $0x248] sm:$0xff] }
  0xd0   : > { %v247_v20 = vrot.slane %v1822_v19, %v1820_v17 }
  0xd2   : > { %v249_v21 = vsub.f32 %v218_v0, %v247_v20  ;;  %v259_v22 = vsub.f32 %v1255_v1, %v247_v20  ;;  %v1349_v0 = vpack.c.bf16 %v352_v62, %v344_v61  ;;  %v349_v1 = vld [vmem:[#allocation2 + $0x140] sm:$0xff]  ;;  %v376_v20 = vld [vmem:[#allocation2 + $0x218] sm:$0xff] }
  0xd3   : > { %v1287_v4 = vpack.c.bf16 %v349_v1, %v341_v63  ;;  %v421_v61 = vld [vmem:[#allocation2 + $0x380] sm:$0xff]  ;;  %v423_v63 = vld [vmem:[#allocation2 + $0x390] sm:$0xff] }
  0xd4   : > { %v250_v23 = vmul.f32 %v249_v21, %v249_v21  ;;  %v260_v24 = vmul.f32 %v259_v22, %v259_v22  ;;  %1350 = vmatprep.subr.bf16.mxu1 %v1349_v0  ;;  %v384_v21 = vld [vmem:[#allocation2 + $0x258] sm:$0xff]  ;;  %v1291_v22 = vpack.c.bf16 %v365_v12, %v357_v11  ;;  %v429_v62 = vld [vmem:[#allocation2 + $0x3c0] sm:$0xff]  ;;  %v1369_v0 = vpack.c.bf16 %v432_v57, %v424_v56  ;;  %v431_v1 = vld [vmem:[#allocation2 + $0x3d0] sm:$0xff] }
  0xd5   : > { %1288 = vmatpush1.bf16.msra.mxu0 %v1287_v4  ;;  %1352 = vmatpush1.bf16.msra.mxu1 %v1351_v8  ;;  %v440_v4 = vld [vmem:[#allocation2 + $0x418] sm:$0xff]  ;;  %v1307_v6 = vpack.c.bf16 %v429_v62, %v421_v61  ;;  %v1371_v7 = vpack.c.bf16 %v431_v1, %v423_v63  ;;  %v1309_v8 = vpack.c.bf16 %v446_v3, %v438_v2  ;;  %v439_v11 = vld [vmem:[#allocation2 + $0x410] sm:$0xff] }
  0xd6   : > { %v252_v25 = vcombine.high %v250_v23, %v250_v23  ;;  %v262_v26 = vcombine.high %v260_v24, %v260_v24  ;;  %v254_v27 = vsel %vm222_vm0, %v250_v23, 0.0  ;;  %v264_v31 = vsel %vm222_vm0, %v260_v24, 0.0  ;;  %1290 = vmatprep.subr.bf16.mxu0 %v1289_v9  ;;  %1354 = vmatprep.subr.bf16.mxu1 %v1353_v13  ;;  %v437_v9 = vld [vmem:[#allocation2 + $0x400] sm:$0xff]  ;;  %v447_v13 = vld [vmem:[#allocation2 + $0x450] sm:$0xff] }
  0xd7   : > { %v1355_v23 = vpack.c.bf16 %v367_v15, %v359_v14  ;;  %v1293_v24 = vpack.c.bf16 %v382_v18, %v374_v16  ;;  %v1373_v12 = vpack.c.bf16 %v448_v5, %v440_v4  ;;  %v454_v14 = vld [vmem:[#allocation2 + $0x488] sm:$0xff]  ;;  %v456_v16 = vld [vmem:[#allocation2 + $0x498] sm:$0xff]  ;;  %v1387_v57 = vpack.c.bf16 %v495_v51, %v487_v49  ;;  %v503_v62 = vld [vmem:[#allocation2 + $0x610] sm:$0xff] }
  0xd8   : > { %v255_v28 = vsel %vm222_vm0, %v252_v25, 0.0  ;;  %v265_v30 = vsel %vm222_vm0, %v262_v26, 0.0  ;;  %v373_v25 = vld [vmem:[#allocation2 + $0x200] sm:$0xff]  ;;  %v462_v15 = vld [vmem:[#allocation2 + $0x4c8] sm:$0xff]  ;;  %v464_v18 = vld [vmem:[#allocation2 + $0x4d8] sm:$0xff]  ;;  %v1389_v61 = vpack.c.bf16 %v512_v55, %v504_v54 }
  0xd9   : > { %v256_v29 = vadd.f32 %v255_v28, %v254_v27  ;;  %v266_v32 = vadd.f32 %v265_v30, %v264_v31  ;;  %v381_v26 = vld [vmem:[#allocation2 + $0x240] sm:$0xff]  ;;  %v375_v27 = vld [vmem:[#allocation2 + $0x210] sm:$0xff]  ;;  %v1357_v28 = vpack.c.bf16 %v384_v21, %v376_v20  ;;  %v390_v30 = vld [vmem:[#allocation2 + $0x288] sm:$0xff]  ;;  %1292 = vmatpush1.bf16.msra.mxu0 %v1291_v22  ;;  %1356 = vmatpush1.bf16.msra.mxu1 %v1355_v23 }
  0xda   : > { %v398_v31 = vld [vmem:[#allocation2 + $0x2c8] sm:$0xff]  ;;  %v1295_v34 = vpack.c.bf16 %v381_v26, %v373_v25  ;;  %1294 = vmatprep.subr.bf16.mxu0 %v1293_v24  ;;  %v1311_v20 = vpack.c.bf16 %v445_v10, %v437_v9  ;;  %v1375_v21 = vpack.c.bf16 %v447_v13, %v439_v11  ;;  %v1313_v22 = vpack.c.bf16 %v462_v15, %v454_v14  ;;  %v453_v23 = vld [vmem:[#allocation2 + $0x480] sm:$0xff]  ;;  %v455_v25 = vld [vmem:[#allocation2 + $0x490] sm:$0xff] }
  0xdb   : > { %257 = vadd.xlane.f32.xlu1 %v256_v29  ;;  %v383_v29 = vld [vmem:[#allocation2 + $0x250] sm:$0xff]  ;;  %v1297_v36 = vpack.c.bf16 %v398_v31, %v390_v30  ;;  %1358 = vmatprep.subr.bf16.mxu1 %v1357_v28  ;;  %v461_v24 = vld [vmem:[#allocation2 + $0x4c0] sm:$0xff]  ;;  %v1377_v26 = vpack.c.bf16 %v464_v18, %v456_v16  ;;  %v470_v28 = vld [vmem:[#allocation2 + $0x508] sm:$0xff] }
  0xdc   : > { %v1359_v35 = vpack.c.bf16 %v383_v29, %v375_v27  ;;  %v463_v27 = vld [vmem:[#allocation2 + $0x4d0] sm:$0xff]  ;;  %v478_v29 = vld [vmem:[#allocation2 + $0x548] sm:$0xff]  ;;  %v472_v30 = vld [vmem:[#allocation2 + $0x518] sm:$0xff] }
  0xdd   : > { %1296 = vmatpush1.bf16.msra.mxu0 %v1295_v34  ;;  %v480_v31 = vld [vmem:[#allocation2 + $0x558] sm:$0xff]  ;;  %v1317_v34 = vpack.c.bf16 %v478_v29, %v470_v28  ;;  %v511_v63 = vld [vmem:[#allocation2 + $0x650] sm:$0xff]  ;;  %v518_v9 = vld [vmem:[#allocation2 + $0x688] sm:$0xff] }
  0xde   : > { %1360 = vmatpush1.bf16.msra.mxu1 %v1359_v35  ;;  %1298 = vmatprep.subr.bf16.mxu0 %v1297_v36  ;;  %v469_v35 = vld [vmem:[#allocation2 + $0x500] sm:$0xff]  ;;  %v1381_v38 = vpack.c.bf16 %v480_v31, %v472_v30  ;;  %v1391_v1 = vpack.c.bf16 %v511_v63, %v503_v62  ;;  %v526_v10 = vld [vmem:[#allocation2 + $0x6c8] sm:$0xff]  ;;  %v520_v11 = vld [vmem:[#allocation2 + $0x698] sm:$0xff] }
  0xdf   : > { %267 = vadd.xlane.f32.xlu1 %v266_v32  ;;  %v392_v32 = vld [vmem:[#allocation2 + $0x298] sm:$0xff]  ;;  %v477_v36 = vld [vmem:[#allocation2 + $0x540] sm:$0xff]  ;;  %v1329_v13 = vpack.c.bf16 %v526_v10, %v518_v9  ;;  %v322_v51 = vld [vmem:[#allocation2 + $0x68] sm:$0xff] }
  0xe0   : > { %v1361_v40 = vpack.c.bf16 %v400_v33, %v392_v32  ;;  %v1315_v32 = vpack.c.bf16 %v461_v24, %v453_v23  ;;  %v1379_v33 = vpack.c.bf16 %v463_v27, %v455_v25  ;;  %v1319_v44 = vpack.c.bf16 %v477_v36, %v469_v35  ;;  %v528_v14 = vld [vmem:[#allocation2 + $0x6d8] sm:$0xff]  ;;  %v517_v15 = vld [vmem:[#allocation2 + $0x680] sm:$0xff]  ;;  %v527_v23 = vld [vmem:[#allocation2 + $0x6d0] sm:$0xff] }
  0xe1   : > { %1300 = vmatpush1.bf16.msra.mxu0 %v1299_v46  ;;  %v525_v16 = vld [vmem:[#allocation2 + $0x6c0] sm:$0xff]  ;;  %v542_v27 = vld [vmem:[#allocation2 + $0x748] sm:$0xff]  ;;  %v536_v28 = vld [vmem:[#allocation2 + $0x718] sm:$0xff] }
  0xe2   : > { %1362 = vmatprep.subr.bf16.mxu1 %v1361_v40  ;;  %1302 = vmatprep.subr.bf16.mxu0 %v1301_v48  ;;  %v486_v40 = vld [vmem:[#allocation2 + $0x588] sm:$0xff]  ;;  %v493_v48 = vld [vmem:[#allocation2 + $0x5c0] sm:$0xff]  ;;  %v544_v31 = vld [vmem:[#allocation2 + $0x758] sm:$0xff] }
  0xe3   : > { %1364 = vmatpush1.bf16.msra.mxu1 %v1363_v47  ;;  %v1321_v46 = vpack.c.bf16 %v494_v41, %v486_v40  ;;  %v485_v47 = vld [vmem:[#allocation2 + $0x580] sm:$0xff]  ;;  %v535_v36 = vld [vmem:[#allocation2 + $0x710] sm:$0xff]  ;;  %v552_v40 = vld [vmem:[#allocation2 + $0x798] sm:$0xff] }
  0xe4   : > { %1366 = vmatprep.subr.bf16.mxu1 %v1365_v52  ;;  %v502_v52 = vld [vmem:[#allocation2 + $0x608] sm:$0xff]  ;;  %v1323_v56 = vpack.c.bf16 %v493_v48, %v485_v47  ;;  %v275_v18 = vld [vmem:[%s1915_s2] sm:$0xf]  ;;  %v551_v47 = vld [vmem:[#allocation2 + $0x790] sm:$0xff] }
  0xe5   : > { %1304 = vmatpush1.bf16.msra.mxu0 %v1303_v58  ;;  %v1325_v58 = vpack.c.bf16 %v510_v53, %v502_v52  ;;  %v559_v48 = vld [vmem:[#allocation2 + $0x7d0] sm:$0xff]  ;;  %v316_v52 = vld [vmem:[#allocation2 + $0x38] sm:$0xff]  ;;  %v313_v63 = vld [vmem:[#allocation2 + $0x20] sm:$0xff] }
  0xe6   : > { %1306 = vmatprep.subr.bf16.mxu0 %v1305_v60  ;;  %v509_v60 = vld [vmem:[#allocation2 + $0x640] sm:$0xff]  ;;  %v1403_v49 = vpack.c.bf16 %v559_v48, %v551_v47  ;;  %v324_v54 = vld [vmem:[#allocation2 + $0x78] sm:$0xff] }
  0xe7   : > { %1368 = vmatpush1.bf16.msra.mxu1 %v1367_v59  ;;  %v501_v59 = vld [vmem:[#allocation2 + $0x600] sm:$0xff]  ;;  %v1469_v55 = vpack.c.bf16 %v324_v54, %v316_v52  ;;  %v387_v52 = vld [vmem:[#allocation2 + $0x270] sm:$0xff]  ;;  %v402_v54 = vld [vmem:[#allocation2 + $0x2e8] sm:$0xff] }
  0xe8   : > { %1370 = vmatprep.subr.bf16.mxu1 %v1369_v0  ;;  %v1327_v0 = vpack.c.bf16 %v509_v60, %v501_v59  ;;  %v377_v47 = vld [vmem:[#allocation2 + $0x220] sm:$0xff] }
  0xe9   : > { %1308 = vmatpush1.bf16.msra.mxu0 %v1307_v6  ;;  %v385_v48 = vld [vmem:[#allocation2 + $0x260] sm:$0xff] }
  0xea   : > { %1310 = vmatprep.subr.bf16.mxu0 %v1309_v8 }
  0xeb   : > { %1372 = vmatpush1.bf16.msra.mxu1 %v1371_v7  ;;  %v271_v7 = vld [vmem:[%s1914_s1] sm:$0xf] }
  0xec   : > { %1374 = vmatprep.subr.bf16.mxu1 %v1373_v12 }
  0xed   : > { %1312 = vmatpush1.bf16.msra.mxu0 %v1311_v20  ;;  %v1393_v20 = vpack.c.bf16 %v528_v14, %v520_v11  ;;  %v329_v11 = vld [vmem:[#allocation2 + $0xa0] sm:$0xff]  ;;  %v346_v14 = vld [vmem:[#allocation2 + $0x128] sm:$0xff] }
  0xee   : > { %1314 = vmatprep.subr.bf16.mxu0 %v1313_v22  ;;  %v519_v22 = vld [vmem:[#allocation2 + $0x690] sm:$0xff] }
  0xef   : > { %1376 = vmatpush1.bf16.msra.mxu1 %v1375_v21  ;;  %v1331_v21 = vpack.c.bf16 %v525_v16, %v517_v15  ;;  %v1395_v25 = vpack.c.bf16 %v527_v23, %v519_v22 }
  0xf0   : > { %1378 = vmatprep.subr.bf16.mxu1 %v1377_v26  ;;  %v534_v26 = vld [vmem:[#allocation2 + $0x708] sm:$0xff] }
  0xf1   : > { %1316 = vmatpush1.bf16.msra.mxu0 %v1315_v32  ;;  %v1333_v30 = vpack.c.bf16 %v542_v27, %v534_v26  ;;  %v533_v32 = vld [vmem:[#allocation2 + $0x700] sm:$0xff] }
  0xf2   : > { %1318 = vmatprep.subr.bf16.mxu0 %v1317_v34  ;;  %v1397_v34 = vpack.c.bf16 %v544_v31, %v536_v28  ;;  %v347_v28 = vld [vmem:[#allocation2 + $0x130] sm:$0xff]  ;;  %v370_v31 = vld [vmem:[#allocation2 + $0x1e8] sm:$0xff] }
  0xf3   : > { %1380 = vmatpush1.bf16.msra.mxu1 %v1379_v33  ;;  %v541_v33 = vld [vmem:[#allocation2 + $0x740] sm:$0xff] }
  0xf4   : > { %1382 = vmatprep.subr.bf16.mxu1 %v1381_v38  ;;  %v1335_v35 = vpack.c.bf16 %v541_v33, %v533_v32  ;;  %v550_v38 = vld [vmem:[#allocation2 + $0x788] sm:$0xff]  ;;  %v364_v32 = vld [vmem:[#allocation2 + $0x1b8] sm:$0xff] }
  0xf5   : > { %1320 = vmatpush1.bf16.msra.mxu0 %v1319_v44  ;;  %v1337_v41 = vpack.c.bf16 %v558_v39, %v550_v38  ;;  %v557_v44 = vld [vmem:[#allocation2 + $0x7c0] sm:$0xff]  ;;  %v372_v33 = vld [vmem:[#allocation2 + $0x1f8] sm:$0xff]  ;;  %v363_v39 = vld [vmem:[#allocation2 + $0x1b0] sm:$0xff] }
  0xf6   : > { %1322 = vmatprep.subr.bf16.mxu0 %v1321_v46  ;;  %v1339_v46 = vpack.c.bf16 %v557_v44, %v549_v43  ;;  %v1481_v38 = vpack.c.bf16 %v372_v33, %v364_v32  ;;  %v380_v43 = vld [vmem:[#allocation2 + $0x238] sm:$0xff]  ;;  %v441_v33 = vld [vmem:[#allocation2 + $0x420] sm:$0xff] }
  0xf7   : > { %1384 = vmatpush1.bf16.msra.mxu1 %v1383_v45  ;;  %v1401_v45 = vpack.c.bf16 %v560_v42, %v552_v40  ;;  %v371_v40 = vld [vmem:[#allocation2 + $0x1f0] sm:$0xff]  ;;  %v386_v42 = vld [vmem:[#allocation2 + $0x268] sm:$0xff]  ;;  %v388_v44 = vld [vmem:[#allocation2 + $0x278] sm:$0xff] }
  0xf8   : > { %1386 = vmatprep.subr.bf16.mxu1 %v1385_v50  ;;  %v314_v50 = vld [vmem:[#allocation2 + $0x28] sm:$0xff] }
  0xf9   : > { %1324 = vmatpush1.bf16.msra.mxu0 %v1323_v56  ;;  %v1405_v53 = vpack.c.bf16 %v322_v51, %v314_v50  ;;  %v1485_v50 = vpack.c.bf16 %v388_v44, %v380_v43  ;;  %v379_v51 = vld [vmem:[#allocation2 + $0x230] sm:$0xff]  ;;  %v457_v44 = vld [vmem:[#allocation2 + $0x4a0] sm:$0xff] }
  0xfa   : > { %1326 = vmatprep.subr.bf16.mxu0 %v1325_v58  ;;  %v281_v58 = vld [vmem:[%s280_s16] sm:$0xff] }
  0xfb   : > { %1388 = vmatpush1.bf16.msra.mxu1 %v1387_v57 }
  0xfc   : > { %1390 = vmatprep.subr.bf16.mxu1 %v1389_v61 }
  0xfd   : > { %1328 = vmatpush1.bf16.msra.mxu0 %v1327_v0  ;;  %v321_v0 = vld [vmem:[#allocation2 + $0x60] sm:$0xff] }
  0xfe   : > { %1330 = vmatprep.subr.bf16.mxu0 %v1329_v13  ;;  %v1407_v9 = vpack.c.bf16 %v321_v0, %v313_v63  ;;  %v331_v13 = vld [vmem:[#allocation2 + $0xb0] sm:$0xff] }
  0xff   : > { %1392 = vmatpush1.bf16.msra.mxu1 %v1391_v1  ;;  %v315_v1 = vld [vmem:[#allocation2 + $0x30] sm:$0xff] }
 0x100   : > { %1394 = vmatprep.subr.bf16.mxu1 %v1393_v20  ;;  %v348_v20 = vld [vmem:[#allocation2 + $0x138] sm:$0xff]  ;;  %v395_v63 = vld [vmem:[#allocation2 + $0x2b0] sm:$0xff] }
 0x101   : > { %1332 = vmatpush1.bf16.msra.mxu0 %v1331_v21  ;;  %v356_v21 = vld [vmem:[#allocation2 + $0x178] sm:$0xff]  ;;  %v403_v0 = vld [vmem:[#allocation2 + $0x2f0] sm:$0xff] }
 0x102   : > { %1334 = vmatprep.subr.bf16.mxu0 %v1333_v30  ;;  %v1477_v27 = vpack.c.bf16 %v356_v21, %v348_v20  ;;  %v362_v30 = vld [vmem:[#allocation2 + $0x1a8] sm:$0xff]  ;;  %v425_v21 = vld [vmem:[#allocation2 + $0x3a0] sm:$0xff] }
 0x103   : > { %1396 = vmatpush1.bf16.msra.mxu1 %v1395_v25  ;;  %v353_v25 = vld [vmem:[#allocation2 + $0x160] sm:$0xff] }
 0x104   : > { %1398 = vmatprep.subr.bf16.mxu1 %v1397_v34 }
 0x105   : > { %1336 = vmatpush1.bf16.msra.mxu0 %v1335_v35 }
 0x106   : > { %1338 = vmatprep.subr.bf16.mxu0 %v1337_v41  ;;  %v378_v41 = vld [vmem:[#allocation2 + $0x228] sm:$0xff] }
 0x109   : > { %1340 = vmatpush1.bf16.msra.mxu0 %v1339_v46  ;;  %v1483_v46 = vpack.c.bf16 %v371_v40, %v363_v39  ;;  %v466_v39 = vld [vmem:[#allocation2 + $0x4e8] sm:$0xff]  ;;  %v460_v40 = vld [vmem:[#allocation2 + $0x4b8] sm:$0xff] }
 0x10a   : > { %1406 = vmatprep.subr.bf16.mxu0 %v1405_v53  ;;  %v394_v53 = vld [vmem:[#allocation2 + $0x2a8] sm:$0xff] }
 0x168   : > { %v258_v2 = vpop.xlane.xlu1 %257 }
 0x16c   : > { %v268_v3 = vpop.xlane.xlu1 %267 }
 0x16d   : > { %v269_v4 = vadd.f32 %v268_v3, %v258_v2  ;;  %v323_v2 = vld [vmem:[#allocation2 + $0x70] sm:$0xff] }
 0x16e   : > { %v1471_v10 = vpack.c.bf16 %v323_v2, %v315_v1  ;;  %v410_v1 = vld [vmem:[#allocation2 + $0x328] sm:$0xff] }
 0x16f   : > { %v270_v5 = vmul.f32 0.001953125, %v269_v4  ;;  %v330_v4 = vld [vmem:[#allocation2 + $0xa8] sm:$0xff] }
 0x170   : > { %v418_v2 = vld [vmem:[#allocation2 + $0x368] sm:$0xff] }
 0x171   : > { %v272_v6 = vadd.f32 1e-05, %v270_v5  ;;  %v338_v5 = vld [vmem:[#allocation2 + $0xe8] sm:$0xff] }
 0x172   : > { %v1409_v15 = vpack.c.bf16 %v338_v5, %v330_v4  ;;  %v412_v4 = vld [vmem:[#allocation2 + $0x338] sm:$0xff] }
 0x173   : > { %1592 = vrsqrt.f32 %v272_v6  ;;  %v332_v6 = vld [vmem:[#allocation2 + $0xb8] sm:$0xff] }
 0x174   : > { %v420_v5 = vld [vmem:[#allocation2 + $0x378] sm:$0xff] }
 0x17d   : > { %v1593_v8 = vpop.eup %1592 }
 0x17e   : > { %v274_v12 = vmul.f32 %v1593_v8, %v271_v7  ;;  %v340_v7 = vld [vmem:[#allocation2 + $0xf8] sm:$0xff] }
 0x17f   : > { %v1473_v16 = vpack.c.bf16 %v340_v7, %v332_v6  ;;  %v1491_v7 = vpack.c.bf16 %v403_v0, %v395_v63  ;;  %v498_v63 = vld [vmem:[#allocation2 + $0x5e8] sm:$0xff]  ;;  %v492_v0 = vld [vmem:[#allocation2 + $0x5b8] sm:$0xff] }
 0x180   : > { %284 = vperm.xlu0 %1588, %v274_v12   ;;  %v276_v24 = vmul.f32 %v274_v12, %v1822_v19  ;;  %v1399_v19 = vpack.c.bf16 %v543_v37, %v535_v36  ;;  %v337_v12 = vld [vmem:[#allocation2 + $0xe0] sm:$0xff] }
 0x181   : > { %v1411_v22 = vpack.c.bf16 %v337_v12, %v329_v11  ;;  %v361_v36 = vld [vmem:[#allocation2 + $0x1a0] sm:$0xff]  ;;  %v1493_v11 = vpack.c.bf16 %v420_v5, %v412_v4  ;;  %v411_v12 = vld [vmem:[#allocation2 + $0x330] sm:$0xff] }
 0x182   : > { %v277_v29 = vsub.f32 %v275_v18, %v276_v24  ;;  %1400 = vmatpush1.bf16.msra.mxu1 %v1399_v19  ;;  %v354_v18 = vld [vmem:[#allocation2 + $0x168] sm:$0xff]  ;;  %v345_v24 = vld [vmem:[#allocation2 + $0x120] sm:$0xff]  ;;  %v1417_v19 = vpack.c.bf16 %v370_v31, %v362_v30  ;;  %v452_v30 = vld [vmem:[#allocation2 + $0x478] sm:$0xff] }
 0x183   : > { %1402 = vmatprep.subr.bf16.mxu1 %v1401_v45  ;;  %v1413_v26 = vpack.c.bf16 %v354_v18, %v346_v14  ;;  %v1415_v34 = vpack.c.bf16 %v353_v25, %v345_v24  ;;  %v369_v37 = vld [vmem:[#allocation2 + $0x1e0] sm:$0xff]  ;;  %v434_v14 = vld [vmem:[#allocation2 + $0x3e8] sm:$0xff]  ;;  %v427_v25 = vld [vmem:[#allocation2 + $0x3b0] sm:$0xff] }
 0x184   : > { %297 = vperm.xlu1 %1589, %v277_v29   ;;  %v355_v29 = vld [vmem:[#allocation2 + $0x170] sm:$0xff]  ;;  %v1419_v45 = vpack.c.bf16 %v369_v37, %v361_v36  ;;  %v489_v5 = vld [vmem:[#allocation2 + $0x5a0] sm:$0xff] }
 0x185   : > { %v1479_v35 = vpack.c.bf16 %v355_v29, %v347_v28  ;;  %v450_v28 = vld [vmem:[#allocation2 + $0x468] sm:$0xff]  ;;  %v444_v29 = vld [vmem:[#allocation2 + $0x438] sm:$0xff]  ;;  %v443_v37 = vld [vmem:[#allocation2 + $0x430] sm:$0xff] }
 0x186   : > { %1404 = vmatpush1.bf16.msra.mxu1 %v1403_v49  ;;  %v1421_v49 = vpack.c.bf16 %v386_v42, %v378_v41  ;;  %v1501_v36 = vpack.c.bf16 %v452_v30, %v444_v29  ;;  %v468_v41 = vld [vmem:[#allocation2 + $0x4f8] sm:$0xff]  ;;  %v521_v30 = vld [vmem:[#allocation2 + $0x6a0] sm:$0xff] }
 0x187   : > { %1470 = vmatprep.subr.bf16.mxu1 %v1469_v55  ;;  %v396_v55 = vld [vmem:[#allocation2 + $0x2b8] sm:$0xff] }
 0x1ff   : > { %v285_v56 = vpop.permute.xlu0 %284 }
 0x200   : > { %v292_v57 = vrot.slane %v285_v56, %v1820_v17  ;;  %v404_v56 = vld [vmem:[#allocation2 + $0x2f8] sm:$0xff] }
 0x202   : > { %v294_v60 = vmul.f32 %v292_v57, %v281_v58  ;;  %v1423_v57 = vpack.c.bf16 %v385_v48, %v377_v47  ;;  %v1487_v58 = vpack.c.bf16 %v387_v52, %v379_v51  ;;  %v1505_v47 = vpack.c.bf16 %v468_v41, %v460_v40  ;;  %v459_v48 = vld [vmem:[#allocation2 + $0x4b0] sm:$0xff]  ;;  %v482_v51 = vld [vmem:[#allocation2 + $0x568] sm:$0xff]  ;;  %v476_v52 = vld [vmem:[#allocation2 + $0x538] sm:$0xff] }
 0x203   : > { %v298_v59 = vpop.permute.xlu1 %297  ;;  %v537_v41 = vld [vmem:[#allocation2 + $0x720] sm:$0xff] }
 0x204   : > { %v305_v61 = vrot.slane %v298_v59, %v1820_v17  ;;  %v339_v17 = vld [vmem:[#allocation2 + $0xf0] sm:$0xff]  ;;  %v393_v59 = vld [vmem:[#allocation2 + $0x2a0] sm:$0xff] }
 0x205   : > { %v1475_v23 = vpack.c.bf16 %v339_v17, %v331_v13  ;;  %v419_v13 = vld [vmem:[#allocation2 + $0x370] sm:$0xff]  ;;  %v426_v17 = vld [vmem:[#allocation2 + $0x3a8] sm:$0xff] }
 0x206   : > { %v307_v62 = vadd.f32 %v305_v61, %v294_v60  ;;  %v401_v60 = vld [vmem:[#allocation2 + $0x2e0] sm:$0xff]  ;;  %v1425_v61 = vpack.c.bf16 %v402_v54, %v394_v53  ;;  %v1495_v20 = vpack.c.bf16 %v419_v13, %v411_v12  ;;  %v484_v53 = vld [vmem:[#allocation2 + $0x578] sm:$0xff]  ;;  %v514_v12 = vld [vmem:[#allocation2 + $0x668] sm:$0xff] }
 0x207   : > { %v1427_v6 = vpack.c.bf16 %v401_v60, %v393_v59  ;;  %v1509_v59 = vpack.c.bf16 %v484_v53, %v476_v52  ;;  %v475_v60 = vld [vmem:[#allocation2 + $0x530] sm:$0xff]  ;;  %v508_v13 = vld [vmem:[#allocation2 + $0x638] sm:$0xff]  ;;  %v553_v53 = vld [vmem:[#allocation2 + $0x7a0] sm:$0xff] }
 0x208   : > { %v1843_v3 = vmax.f32 %v307_v62, 0.0  ;;  %v1489_v62 = vpack.c.bf16 %v404_v56, %v396_v55  ;;  %v473_v56 = vld [vmem:[#allocation2 + $0x520] sm:$0xff] }
 0x20a   : > { %v566_v8 = vcombine.high %v1843_v3, %v1843_v3 }
 0x20c   : > { %632 = vmatprep.mubr.f32.mxu0 %v566_v8  ;;  %703 = vmatprep.mubr.f32.mxu1 %v566_v8 }
 0x20d   : > { %633 = vmatmul.mubr.f32.vlgmr.msra.gmra.mrb[0].mxu0 %v1843_v3  ;;  %704 = vmatmul.mubr.f32.vlgmr.msra.gmra.mrb[0].mxu1 %v1843_v3 }
 0x20e   : > { %1408 = vmatpush1.bf16.msra.mxu0 %v1407_v9  ;;  %1472 = vmatpush1.bf16.msra.mxu1 %v1471_v10  ;;  %v417_v9 = vld [vmem:[#allocation2 + $0x360] sm:$0xff]  ;;  %v1429_v10 = vpack.c.bf16 %v418_v2, %v410_v1  ;;  %v500_v1 = vld [vmem:[#allocation2 + $0x5f8] sm:$0xff] }
 0x20f   : > { %774 = vmatprep.mubr.f32.mxu0 %v566_v8  ;;  %845 = vmatprep.mubr.f32.mxu1 %v566_v8  ;;  %v409_v8 = vld [vmem:[#allocation2 + $0x320] sm:$0xff] }
 0x210   : > { %1410 = vmatprep.subr.bf16.mxu0 %v1409_v15  ;;  %1474 = vmatprep.subr.bf16.mxu1 %v1473_v16  ;;  %v428_v15 = vld [vmem:[#allocation2 + $0x3b8] sm:$0xff]  ;;  %v1431_v18 = vpack.c.bf16 %v417_v9, %v409_v8  ;;  %v1513_v8 = vpack.c.bf16 %v500_v1, %v492_v0  ;;  %v491_v9 = vld [vmem:[#allocation2 + $0x5b0] sm:$0xff] }
 0x211   : > { %v436_v16 = vld [vmem:[#allocation2 + $0x3f8] sm:$0xff] }
 0x212   : > { %1412 = vmatpush1.bf16.msra.mxu0 %v1411_v22  ;;  %1476 = vmatpush1.bf16.msra.mxu1 %v1475_v23  ;;  %v433_v22 = vld [vmem:[#allocation2 + $0x3e0] sm:$0xff]  ;;  %v1433_v23 = vpack.c.bf16 %v434_v14, %v426_v17  ;;  %v1497_v24 = vpack.c.bf16 %v436_v16, %v428_v15  ;;  %v516_v17 = vld [vmem:[#allocation2 + $0x678] sm:$0xff] }
 0x213   : > { %1414 = vmatprep.subr.bf16.mxu0 %v1413_v26  ;;  %1478 = vmatprep.subr.bf16.mxu1 %v1477_v27  ;;  %v435_v26 = vld [vmem:[#allocation2 + $0x3f0] sm:$0xff]  ;;  %v442_v27 = vld [vmem:[#allocation2 + $0x428] sm:$0xff]  ;;  %v1435_v31 = vpack.c.bf16 %v433_v22, %v425_v21  ;;  %v505_v16 = vld [vmem:[#allocation2 + $0x620] sm:$0xff]  ;;  %v1517_v21 = vpack.c.bf16 %v516_v17, %v508_v13 }
 0x214   : > { %v1499_v32 = vpack.c.bf16 %v435_v26, %v427_v25  ;;  %v507_v22 = vld [vmem:[#allocation2 + $0x630] sm:$0xff]  ;;  %v530_v25 = vld [vmem:[#allocation2 + $0x6e8] sm:$0xff]  ;;  %v524_v26 = vld [vmem:[#allocation2 + $0x6b8] sm:$0xff] }
 0x216   : > { %1416 = vmatpush1.bf16.msra.mxu0 %v1415_v34  ;;  %1480 = vmatpush1.bf16.msra.mxu1 %v1479_v35  ;;  %v449_v34 = vld [vmem:[#allocation2 + $0x460] sm:$0xff]  ;;  %v1437_v35 = vpack.c.bf16 %v450_v28, %v442_v27  ;;  %v532_v27 = vld [vmem:[#allocation2 + $0x6f8] sm:$0xff] }
 0x217   : > { %1418 = vmatprep.subr.bf16.mxu0 %v1417_v19  ;;  %1482 = vmatprep.subr.bf16.mxu1 %v1481_v38  ;;  %v451_v19 = vld [vmem:[#allocation2 + $0x470] sm:$0xff]  ;;  %v458_v38 = vld [vmem:[#allocation2 + $0x4a8] sm:$0xff]  ;;  %v1439_v42 = vpack.c.bf16 %v449_v34, %v441_v33  ;;  %v1521_v33 = vpack.c.bf16 %v532_v27, %v524_v26 }
 0x218   : > { %v1503_v43 = vpack.c.bf16 %v451_v19, %v443_v37  ;;  %v523_v34 = vld [vmem:[#allocation2 + $0x6b0] sm:$0xff]  ;;  %v546_v37 = vld [vmem:[#allocation2 + $0x768] sm:$0xff]  ;;  %v540_v19 = vld [vmem:[#allocation2 + $0x738] sm:$0xff] }
 0x21a   : > { %1420 = vmatpush1.bf16.msra.mxu0 %v1419_v45  ;;  %1484 = vmatpush1.bf16.msra.mxu1 %v1483_v46  ;;  %v465_v45 = vld [vmem:[#allocation2 + $0x4e0] sm:$0xff]  ;;  %v1441_v46 = vpack.c.bf16 %v466_v39, %v458_v38  ;;  %v548_v38 = vld [vmem:[#allocation2 + $0x778] sm:$0xff] }
 0x21b   : > { %1422 = vmatprep.subr.bf16.mxu0 %v1421_v49  ;;  %1486 = vmatprep.subr.bf16.mxu1 %v1485_v50  ;;  %v467_v49 = vld [vmem:[#allocation2 + $0x4f0] sm:$0xff]  ;;  %v474_v50 = vld [vmem:[#allocation2 + $0x528] sm:$0xff]  ;;  %v1443_v54 = vpack.c.bf16 %v465_v45, %v457_v44  ;;  %v1525_v44 = vpack.c.bf16 %v548_v38, %v540_v19 }
 0x21c   : > { %v1507_v55 = vpack.c.bf16 %v467_v49, %v459_v48  ;;  %v539_v45 = vld [vmem:[#allocation2 + $0x730] sm:$0xff]  ;;  %v562_v48 = vld [vmem:[#allocation2 + $0x7e8] sm:$0xff]  ;;  %v556_v49 = vld [vmem:[#allocation2 + $0x7b8] sm:$0xff] }
 0x21e   : > { %1424 = vmatpush1.bf16.msra.mxu0 %v1423_v57  ;;  %1488 = vmatpush1.bf16.msra.mxu1 %v1487_v58  ;;  %v481_v57 = vld [vmem:[#allocation2 + $0x560] sm:$0xff]  ;;  %v1445_v58 = vpack.c.bf16 %v482_v51, %v474_v50  ;;  %v564_v50 = vld [vmem:[#allocation2 + $0x7f8] sm:$0xff] }
 0x21f   : > { %1426 = vmatprep.subr.bf16.mxu0 %v1425_v61  ;;  %1490 = vmatprep.subr.bf16.mxu1 %v1489_v62  ;;  %v483_v61 = vld [vmem:[#allocation2 + $0x570] sm:$0xff]  ;;  %v490_v62 = vld [vmem:[#allocation2 + $0x5a8] sm:$0xff]  ;;  %v1447_v2 = vpack.c.bf16 %v481_v57, %v473_v56  ;;  %v561_v56 = vld [vmem:[#allocation2 + $0x7e0] sm:$0xff] }
 0x220   : > { %v1511_v4 = vpack.c.bf16 %v483_v61, %v475_v60  ;;  %v555_v57 = vld [vmem:[#allocation2 + $0x7b0] sm:$0xff]  ;;  %v1695_v61 = vmov 0.0  }
 0x222   : > { %1428 = vmatpush1.bf16.msra.mxu0 %v1427_v6  ;;  %1492 = vmatpush1.bf16.msra.mxu1 %v1491_v7  ;;  %v497_v6 = vld [vmem:[#allocation2 + $0x5e0] sm:$0xff]  ;;  %v1449_v7 = vpack.c.bf16 %v498_v63, %v490_v62 }
 0x223   : > { %1430 = vmatprep.subr.bf16.mxu0 %v1429_v10  ;;  %1494 = vmatprep.subr.bf16.mxu1 %v1493_v11  ;;  %v499_v10 = vld [vmem:[#allocation2 + $0x5f0] sm:$0xff]  ;;  %v506_v11 = vld [vmem:[#allocation2 + $0x628] sm:$0xff]  ;;  %v1451_v14 = vpack.c.bf16 %v497_v6, %v489_v5 }
 0x224   : > { %v1515_v15 = vpack.c.bf16 %v499_v10, %v491_v9 }
 0x226   : > { %1432 = vmatpush1.bf16.msra.mxu0 %v1431_v18  ;;  %1496 = vmatpush1.bf16.msra.mxu1 %v1495_v20  ;;  %v513_v18 = vld [vmem:[#allocation2 + $0x660] sm:$0xff]  ;;  %v1453_v20 = vpack.c.bf16 %v514_v12, %v506_v11 }
 0x227   : > { %1434 = vmatprep.subr.bf16.mxu0 %v1433_v23  ;;  %1498 = vmatprep.subr.bf16.mxu1 %v1497_v24  ;;  %v515_v23 = vld [vmem:[#allocation2 + $0x670] sm:$0xff]  ;;  %v522_v24 = vld [vmem:[#allocation2 + $0x6a8] sm:$0xff]  ;;  %v1455_v28 = vpack.c.bf16 %v513_v18, %v505_v16 }
 0x228   : > { %v1519_v29 = vpack.c.bf16 %v515_v23, %v507_v22 }
 0x22a   : > { %1436 = vmatpush1.bf16.msra.mxu0 %v1435_v31  ;;  %1500 = vmatpush1.bf16.msra.mxu1 %v1499_v32  ;;  %v529_v31 = vld [vmem:[#allocation2 + $0x6e0] sm:$0xff]  ;;  %v1457_v32 = vpack.c.bf16 %v530_v25, %v522_v24 }
 0x22b   : > { %1438 = vmatprep.subr.bf16.mxu0 %v1437_v35  ;;  %1502 = vmatprep.subr.bf16.mxu1 %v1501_v36  ;;  %v531_v35 = vld [vmem:[#allocation2 + $0x6f0] sm:$0xff]  ;;  %v538_v36 = vld [vmem:[#allocation2 + $0x728] sm:$0xff]  ;;  %v1459_v39 = vpack.c.bf16 %v529_v31, %v521_v30 }
 0x22c   : > { %v1523_v40 = vpack.c.bf16 %v531_v35, %v523_v34 }
 0x22e   : > { %1440 = vmatpush1.bf16.msra.mxu0 %v1439_v42  ;;  %1504 = vmatpush1.bf16.msra.mxu1 %v1503_v43  ;;  %v545_v42 = vld [vmem:[#allocation2 + $0x760] sm:$0xff]  ;;  %v1461_v43 = vpack.c.bf16 %v546_v37, %v538_v36 }
 0x22f   : > { %1442 = vmatprep.subr.bf16.mxu0 %v1441_v46  ;;  %1506 = vmatprep.subr.bf16.mxu1 %v1505_v47  ;;  %v547_v46 = vld [vmem:[#allocation2 + $0x770] sm:$0xff]  ;;  %v554_v47 = vld [vmem:[#allocation2 + $0x7a8] sm:$0xff]  ;;  %v1463_v51 = vpack.c.bf16 %v545_v42, %v537_v41 }
 0x230   : > { %v1527_v52 = vpack.c.bf16 %v547_v46, %v539_v45 }
 0x232   : > { %1444 = vmatpush1.bf16.msra.mxu0 %v1443_v54  ;;  %1508 = vmatpush1.bf16.msra.mxu1 %v1507_v55  ;;  %v1465_v54 = vpack.c.bf16 %v562_v48, %v554_v47  ;;  %v1529_v55 = vpack.c.bf16 %v564_v50, %v556_v49 }
 0x233   : > { %1446 = vmatprep.subr.bf16.mxu0 %v1445_v58  ;;  %1510 = vmatprep.subr.bf16.mxu1 %v1509_v59  ;;  %v563_v58 = vld [vmem:[#allocation2 + $0x7f0] sm:$0xff]  ;;  %v1467_v59 = vpack.c.bf16 %v561_v56, %v553_v53 }
 0x234   : > { %v1531_v60 = vpack.c.bf16 %v563_v58, %v555_v57 }
 0x236   : > { %1448 = vmatpush1.bf16.msra.mxu0 %v1447_v2  ;;  %1512 = vmatpush1.bf16.msra.mxu1 %v1511_v4  ;;  %v852_v2 = vld [vmem:[%s1916_s3] sm:$0xff] }
 0x237   : > { %1450 = vmatprep.subr.bf16.mxu0 %v1449_v7  ;;  %1514 = vmatprep.subr.bf16.mxu1 %v1513_v8 }
 0x23a   : > { %1452 = vmatpush1.bf16.msra.mxu0 %v1451_v14  ;;  %1516 = vmatpush1.bf16.msra.mxu1 %v1515_v15 }
 0x23b   : > { %1454 = vmatprep.subr.bf16.mxu0 %v1453_v20  ;;  %1518 = vmatprep.subr.bf16.mxu1 %v1517_v21 }
 0x23e   : > { %1456 = vmatpush1.bf16.msra.mxu0 %v1455_v28  ;;  %1520 = vmatpush1.bf16.msra.mxu1 %v1519_v29 }
 0x23f   : > { %1458 = vmatprep.subr.bf16.mxu0 %v1457_v32  ;;  %1522 = vmatprep.subr.bf16.mxu1 %v1521_v33 }
 0x242   : > { %1460 = vmatpush1.bf16.msra.mxu0 %v1459_v39  ;;  %1524 = vmatpush1.bf16.msra.mxu1 %v1523_v40 }
 0x243   : > { %1462 = vmatprep.subr.bf16.mxu0 %v1461_v43  ;;  %1526 = vmatprep.subr.bf16.mxu1 %v1525_v44 }
 0x246   : > { %1464 = vmatpush1.bf16.msra.mxu0 %v1463_v51  ;;  %1528 = vmatpush1.bf16.msra.mxu1 %v1527_v52 }
 0x247   : > { %1466 = vmatprep.subr.bf16.mxu0 %v1465_v54  ;;  %1530 = vmatprep.subr.bf16.mxu1 %v1529_v55 }
 0x24a   : > { %1468 = vmatpush1.bf16.msra.mxu0 %v1467_v59  ;;  %1532 = vmatpush1.bf16.msra.mxu1 %v1531_v60 }
 0x24d   : > { %775 = vmatmul.mubr.f32.vlgmr.msra.gmra.mrb[2].mxu0 %v1843_v3  ;;  %846 = vmatmul.mubr.f32.vlgmr.msra.gmra.mrb[2].mxu1 %v1843_v3 }
 0x24e   : > { %945 = vmatprep.mubr.f32.mxu0 %v1695_v61  ;;  %1016 = vmatprep.mubr.f32.mxu1 %v1695_v61 }
 0x2e0   : > { %v634_v62 = vpop.f32.mrb[0].mxu0  ;;  %v705_v63 = vpop.f32.mrb[0].mxu1 }
 0x2e1   : > { %v636_v0 = vpop.f32.mrb[1].mxu0  ;;  %v707_v1 = vpop.f32.mrb[1].mxu1 }
 0x2e2   : > { %1258 = vmatprep.subr.msk.mxu0 %vm222_vm0, %v636_v0  ;;  %1261 = vmatprep.subr.msk.mxu1 %vm222_vm0, %v707_v1 }
 0x2e3   : > { %1259 = vmatpush1.msk.msra.mxu0 %vm222_vm0, %v634_v62  ;;  %1262 = vmatpush1.msk.msra.mxu1 %vm222_vm0, %v705_v63 }
 0x2e4   : > { %1260 = vmatmul.mubr.msk.f32.vlgmr.msra.gmra.mrb[4].mxu0 %vm853_vm1, %v852_v2  ;;  %1263 = vmatmul.mubr.msk.f32.vlgmr.msra.gmra.mrb[4].mxu1 %vm853_vm1, %v852_v2 }
 0x2e5   : > { %1087 = vmatprep.mubr.f32.mxu0 %v1695_v61  ;;  %1158 = vmatprep.mubr.f32.mxu1 %v1695_v61 }
 0x320   : > { %v776_v3 = vpop.f32.mrb[2].mxu0  ;;  %v847_v4 = vpop.f32.mrb[2].mxu1 }
 0x321   : > { %v778_v5 = vpop.f32.mrb[3].mxu0  ;;  %v849_v6 = vpop.f32.mrb[3].mxu1 }
 0x322   : > { %1264 = vmatprep.subr.msk.mxu0 %vm222_vm0, %v778_v5  ;;  %1267 = vmatprep.subr.msk.mxu1 %vm222_vm0, %v849_v6 }
 0x323   : > { %1265 = vmatpush1.msk.msra.mxu0 %vm222_vm0, %v776_v3  ;;  %1268 = vmatpush1.msk.msra.mxu1 %vm222_vm0, %v847_v4 }
 0x324   : > { %1266 = vmatmul.mubr.msk.f32.vlgmr.msra.gmra.mrb[6].mxu0 %vm853_vm1, %v852_v2  ;;  %1269 = vmatmul.mubr.msk.f32.vlgmr.msra.gmra.mrb[6].mxu1 %vm853_vm1, %v852_v2 }
 0x3b7   : > { %v947_v7 = vpop.f32.mrb[4].mxu0  ;;  %v1018_v8 = vpop.f32.mrb[4].mxu1 }
 0x3b8   : > { %1165 = vst [vmem:[%s217_s6] sm:$0xff] %v947_v7  ;;  %1167 = vst [vmem:[%s217_s6 + $0x10] sm:$0xff] %v1018_v8  ;;  %v949_v9 = vpop.f32.mrb[5].mxu0  ;;  %v1020_v10 = vpop.f32.mrb[5].mxu1 }
 0x3b9   : > { %1166 = vst [vmem:[%s217_s6 + $0x8] sm:$0xff] %v949_v9  ;;  %1168 = vst [vmem:[%s217_s6 + $0x18] sm:$0xff] %v1020_v10 }
 0x3f7   : > { %v1089_v11 = vpop.f32.mrb[6].mxu0  ;;  %v1160_v12 = vpop.f32.mrb[6].mxu1 }
 0x3f8   : > { %1169 = vst [vmem:[%s217_s6 + $0x20] sm:$0xff] %v1089_v11  ;;  %1171 = vst [vmem:[%s217_s6 + $0x30] sm:$0xff] %v1160_v12  ;;  %v1091_v13 = vpop.f32.mrb[7].mxu0  ;;  %v1162_v17 = vpop.f32.mrb[7].mxu1 }
 0x3f9   : > { %1170 = vst [vmem:[%s217_s6 + $0x28] sm:$0xff] %v1091_v13  ;;  %1172 = vst [vmem:[%s217_s6 + $0x38] sm:$0xff] %v1162_v17 }
 0x3fa   : > { %1635 = shalt.err (!%p1632_p4)
}
 0x3fb   : > { %s1636_s15 = scalar_lea.hbm %s1871_s7, 1024  ;;  %s1640_s23 = scalar_lea.hbm %s1918_s5, 2048 }
 0x3fc   : > { %p1637_p7 = scmp.ne.s32.totalorder %s1871_s7, %s1636_s15  ;;  %p1641_p13 = scmp.lt.u32.totalorder %s1871_s7, %s1918_s5 }
 0x3fd   : > { %p1642_p1 = scmp.lt.u32.totalorder %s1640_s23, %s1636_s15  ;;  %p1644_p5 = scmp.lt.u32.totalorder %s1636_s15, %s1871_s7 }
 0x3fe   : > { %p1638_p8 = pnand %p1637_p7, %p1929_p6 }
 0x3ff   : > { %p1643_p0 = por %p1642_p1, %p1641_p13 }
 0x400   : > { %p1639_p11 = pneg %p1638_p8 }
 0x401   : > { %p1645_p9 = por %p1644_p5, %p1643_p0 }
 0x403   : > { %p1646_p10 = pnand %p1645_p9, %p1639_p11 }
 0x405   : > { %1649 = shalt.err (!%p1646_p10)
}
 0x406   : > { %1537 = dma.vmem_to_hbm [thread:$0]  (%p1929_p6), %s1873_s10, 1024, %s1871_s7, %s1174_s22  }
 0x407 PF: > { %p1549_p12 = scmp.ge.s32.totalorder %s1688_s21, 2  ;;  %s1200_s6 = sand.u32 1, %s1676_s18  }
 0x408   : > { %p1930_p2 = scmp.ne.s32.totalorder %s1923_s29, 0  ;;  %s1201_s9 = scalar_lea.sflag [#allocation4], %s1200_s6 }
 0x40a   : > { %p1544_p3 = pnand %p1549_p12, %p1930_p2 }
 0x40c   : > { %1671 = dma.done.wait (!%p1544_p3), %s1201_s9, 1024  }
 0x40d   : > { %1673 = vsyncadd (!%p1544_p3), %s1201_s9, 4294966272  ;;  %p16_p4 = scmp.ge.s32.totalorder %s1752_s24, 4   ;;  %s1931_s18 = smov %s1680_s19 }
 0x40e   : > { %s1932_s19 = smov %s1684_s20  ;;  %s1933_s20 = smov %s1763_s27 }
 0x40f   : > { %s1934_s21 = smov %s1752_s24  ;;  %18 = sbr.rel (!%p16_p4) target bundleno = 4 (0x4), region = 79 }
 0x416   :  { %1206 = vsyncpa [#allocation3], 1 }
 0x417   :  { %1208 = vsyncpa [#allocation3 + $0x1], 1 }
 0x418   :  { %1209 = vsyncpa [#allocation4], 1 }
 0x419   :  { %1211 = vsyncpa [#allocation4 + $0x1], 1 }

</bundles_post_ra>
